<compile_context>
chip_gen: v7x
topology: tpu7x:2x2x1
jax: 0.10.0
libtpu: 0.0.40
codegen_flags: <defaults>
</compile_context>

<pallas_src>
import jax
import jax.numpy as jnp
from jax.experimental import pallas as pl
from jax.experimental.pallas import tpu as pltpu

EPS = 1e-5                       # nn.BatchNorm2d default eps
_LANE = 128
_VMEM_LIMIT = 32 * 1024 * 1024   # sized against v7x (64 MiB phys / 32 MiB scoped)


def _rup(x, m):
    return (x + m - 1) // m * m


def _pick_tile(m, target=1024):
    """Largest row tile that divides m, is a multiple of 8, and is <= target."""
    if m <= target:
        return m
    for cand in range(target - (target % 8), 7, -8):
        if m % cand == 0:
            return cand
    return m


# ----------------------------------------------------------------------------
# Pallas kernels
# ----------------------------------------------------------------------------
def _pool_kernel(x_ref, o_ref):
    # x_ref: (2, N, Wo, 2*C)  -- one 2-row pooling band, W pairs folded into C.
    # o_ref: (1, N, Wo, C)
    c = o_ref.shape[-1]
    r = jnp.maximum(x_ref[0], x_ref[1])                 # max over the row pair
    o_ref[0] = jnp.maximum(r[..., :c], r[..., c:])      # max over the col pair


def _conv_row_kernel(x0_ref, x1_ref, x2_ref, w_ref, o_ref, stats_ref):
    # xk_ref:    (1, N, W+2, Cin_p)  padded input row h+k (k = kh tap)
    # w_ref:     (9, Cin_p, Cout_p)  taps ordered (kh, kw), resident in VMEM
    # o_ref:     (1, N*W, Cout_p)    conv output for row h (no bias)
    # stats_ref: (1, 2, Cout_p)      per-row [sum, sum-of-squares] partials
    _, n, wp2, cin = x0_ref.shape
    w_out = wp2 - 2
    cout = o_ref.shape[-1]

    acc = jnp.zeros((n * w_out, cout), jnp.float32)
    for kh, x_ref in enumerate((x0_ref, x1_ref, x2_ref)):
        x = x_ref[0]                                    # (N, W+2, Cin_p)
        for kw in range(3):
            xs = x[:, kw:kw + w_out, :].reshape(n * w_out, cin)
            acc = acc + jnp.dot(xs, w_ref[kh * 3 + kw],
                                preferred_element_type=jnp.float32)

    o_ref[0] = acc
    s0 = jnp.sum(acc, axis=0, keepdims=True)
    s1 = jnp.sum(acc * acc, axis=0, keepdims=True)
    stats_ref[0] = jnp.concatenate([s0, s1], axis=0)


def _bn_relu_kernel(y_ref, scale_ref, shift_ref, o_ref):
    # y_ref: (tile_m, C_p); scale/shift: (1, C_p) resident; o_ref: (tile_m, C_p)
    o_ref[...] = jnp.maximum(y_ref[...] * scale_ref[...] + shift_ref[...], 0.0)


# ----------------------------------------------------------------------------
# Wrappers
# ----------------------------------------------------------------------------
def maxpool2x2(x_hnwc):
    """(H, N, W, C) -> (H//2, N, W//2, C), MaxPool2d(2) semantics."""
    h, n, w, c = x_hnwc.shape
    ho, wo = h // 2, w // 2
    xr = x_hnwc.reshape(h, n, wo, 2 * c)    # fold W pairs into the channel dim
    return pl.pallas_call(
        _pool_kernel,
        out_shape=jax.ShapeDtypeStruct((ho, n, wo, c), x_hnwc.dtype),
        grid_spec=pltpu.PrefetchScalarGridSpec(
            num_scalar_prefetch=0,
            grid=(ho,),
            in_specs=[pl.BlockSpec((2, n, wo, 2 * c), lambda i: (i, 0, 0, 0))],
            out_specs=pl.BlockSpec((1, n, wo, c), lambda i: (i, 0, 0, 0)),
        ),
        compiler_params=pltpu.CompilerParams(
            dimension_semantics=("parallel",),
            vmem_limit_bytes=_VMEM_LIMIT,
        ),
    )(xr)


def conv3x3_rows(x_pad, w9):
    """3x3 conv (pad already applied), one output row per grid step.

    x_pad: (H+2, N, W+2, Cin_p)   zero-padded activation, channel-padded
    w9:    (9, Cin_p, Cout_p)     taps ordered (kh, kw)
    Returns (y, stats): y (H, N*W, Cout_p) f32, stats (H, 2, Cout_p) f32.
    """
    hp2, n, wp2, cin = x_pad.shape
    h, w = hp2 - 2, wp2 - 2
    cout = w9.shape[-1]

    row_spec = lambda k: pl.BlockSpec((1, n, wp2, cin),
                                      lambda i, k=k: (i + k, 0, 0, 0))
    return pl.pallas_call(
        _conv_row_kernel,
        out_shape=(
            jax.ShapeDtypeStruct((h, n * w, cout), jnp.float32),
            jax.ShapeDtypeStruct((h, 2, cout), jnp.float32),
        ),
        grid_spec=pltpu.PrefetchScalarGridSpec(
            num_scalar_prefetch=0,
            grid=(h,),
            in_specs=[
                row_spec(0), row_spec(1), row_spec(2),
                pl.BlockSpec((9, cin, cout), lambda i: (0, 0, 0)),  # resident
            ],
            out_specs=[
                pl.BlockSpec((1, n * w, cout), lambda i: (i, 0, 0)),
                pl.BlockSpec((1, 2, cout), lambda i: (i, 0, 0)),
            ],
        ),
        compiler_params=pltpu.CompilerParams(
            dimension_semantics=("parallel",),
            vmem_limit_bytes=_VMEM_LIMIT,
        ),
    )(x_pad, x_pad, x_pad, w9)


def bn_relu(y2d, scale, shift, tile_m):
    """Elementwise y*scale + shift, ReLU.  y2d: (M, C_p), scale/shift: (C_p,)."""
    m, c = y2d.shape
    return pl.pallas_call(
        _bn_relu_kernel,
        out_shape=jax.ShapeDtypeStruct((m, c), jnp.float32),
        grid_spec=pltpu.PrefetchScalarGridSpec(
            num_scalar_prefetch=0,
            grid=(m // tile_m,),
            in_specs=[
                pl.BlockSpec((tile_m, c), lambda i: (i, 0)),
                pl.BlockSpec((1, c), lambda i: (0, 0)),
                pl.BlockSpec((1, c), lambda i: (0, 0)),
            ],
            out_specs=pl.BlockSpec((tile_m, c), lambda i: (i, 0)),
        ),
        compiler_params=pltpu.CompilerParams(
            dimension_semantics=("parallel",),
            vmem_limit_bytes=_VMEM_LIMIT,
        ),
    )(y2d, scale.reshape(1, c), shift.reshape(1, c))


# ----------------------------------------------------------------------------
# Parameter prep (XLA side, tiny)
# ----------------------------------------------------------------------------
def _prep_weight(w_oihw, cin_p, cout_p):
    """(Cout, Cin, 3, 3) -> (9, Cin_p, Cout_p), taps ordered (kh, kw)."""
    cout, cin = w_oihw.shape[0], w_oihw.shape[1]
    w = jnp.transpose(w_oihw, (2, 3, 1, 0))             # (3, 3, Cin, Cout)
    w = jnp.pad(w, ((0, 0), (0, 0), (0, cin_p - cin), (0, cout_p - cout)))
    return w.reshape(9, cin_p, cout_p)


def _pad_vec(v, c_p):
    return jnp.pad(v, (0, c_p - v.shape[0]))


def _bn_coeffs(stats, m_count, gamma_p, beta_p):
    """Fold per-row [sum, sum^2] partials into per-channel scale/shift."""
    s = jnp.sum(stats, axis=0)                          # (2, C_p)
    mean = s[0] / m_count
    var = jnp.maximum(s[1] / m_count - mean * mean, 0.0)  # biased (training BN)
    scale = gamma_p * jax.lax.rsqrt(var + EPS)
    shift = beta_p - mean * scale
    return scale, shift


# ----------------------------------------------------------------------------
# Forward
# ----------------------------------------------------------------------------
def downscale_forward(x_nchw, params):
    """DownScale.forward: MaxPool2d(2) -> (conv3x3 -> BN -> ReLU) x 2."""
    n, cin, h, w = x_nchw.shape
    cout = params["w1"].shape[0]
    cin_p, cout_p = _rup(cin, _LANE), _rup(cout, _LANE)
    ho, wo = h // 2, w // 2
    m_count = ho * n * wo
    tile_m = _pick_tile(m_count)

    # NCHW -> (H, N, W, C): one grid step per image row across the batch.
    x = jnp.transpose(x_nchw, (2, 0, 3, 1))
    x = maxpool2x2(x)                                       # (Ho, N, Wo, Cin)

    # +1 halo rows/cols for the 3x3 conv; channels padded up to lane-dense 128.
    x = jnp.pad(x, ((1, 1), (0, 0), (1, 1), (0, cin_p - cin)))

    w1 = _prep_weight(params["w1"], cin_p, cout_p)
    w2 = _prep_weight(params["w2"], cout_p, cout_p)
    g1, be1 = _pad_vec(params["g1"], cout_p), _pad_vec(params["beta1"], cout_p)
    g2, be2 = _pad_vec(params["g2"], cout_p), _pad_vec(params["beta2"], cout_p)
    # Conv biases b1/b2 are intentionally unused: training-mode BatchNorm's
    # mean subtraction cancels a per-channel constant exactly.

    # ---- conv1 -> BN -> ReLU ----
    y1, st1 = conv3x3_rows(x, w1)
    sc1, sh1 = _bn_coeffs(st1, m_count, g1, be1)
    a1 = bn_relu(y1.reshape(m_count, cout_p), sc1, sh1, tile_m)
    a1 = a1.reshape(ho, n, wo, cout_p)
    a1 = jnp.pad(a1, ((1, 1), (0, 0), (1, 1), (0, 0)))      # halo for conv2

    # ---- conv2 -> BN -> ReLU ----
    y2, st2 = conv3x3_rows(a1, w2)
    sc2, sh2 = _bn_coeffs(st2, m_count, g2, be2)
    a2 = bn_relu(y2.reshape(m_count, cout_p), sc2, sh2, tile_m)

    a2 = a2.reshape(ho, n, wo, cout_p)[..., :cout]
    return jnp.transpose(a2, (1, 3, 0, 2))                  # -> (N, Cout, Ho, Wo)


# ----------------------------------------------------------------------------
# Pure-JAX reference (PyTorch semantics, incl. the conv bias)
# ----------------------------------------------------------------------------
def _ref_forward(x_nchw, params):
    x = jnp.transpose(x_nchw, (0, 2, 3, 1))  # NHWC
    x = jax.lax.reduce_window(x, -jnp.inf, jax.lax.max,
                              (1, 2, 2, 1), (1, 2, 2, 1), "VALID")

    def block(x, w_oihw, b, g, beta):
        w_hwio = jnp.transpose(w_oihw, (2, 3, 1, 0))
        y = jax.lax.conv_general_dilated(
            x, w_hwio, window_strides=(1, 1), padding="SAME",
            dimension_numbers=("NHWC", "HWIO", "NHWC"))
        y = y + b
        mean = jnp.mean(y, axis=(0, 1, 2), keepdims=True)
        var = jnp.mean((y - mean) ** 2, axis=(0, 1, 2), keepdims=True)
        y = (y - mean) * jax.lax.rsqrt(var + EPS) * g + beta
        return jnp.maximum(y, 0.0)

    x = block(x, params["w1"], params["b1"], params["g1"], params["beta1"])
    x = block(x, params["w2"], params["b2"], params["g2"], params["beta2"])
    return jnp.transpose(x, (0, 3, 1, 2))


# ----------------------------------------------------------------------------
# Main
# ----------------------------------------------------------------------------
if __name__ == "__main__":
    key = jax.random.PRNGKey(0)
    in_channels, out_channels = 4, 8
    N, H, W = 2, 16, 16

    k_x, k_w1, k_b1, k_w2, k_b2 = jax.random.split(key, 5)
    x = jax.random.normal(k_x, (N, in_channels, H, W), dtype=jnp.float32)

    params = {
        "w1": 0.1 * jax.random.normal(k_w1, (out_channels, in_channels, 3, 3), jnp.float32),
        "b1": 0.1 * jax.random.normal(k_b1, (out_channels,), jnp.float32),
        "g1": jnp.ones((out_channels,), jnp.float32),
        "beta1": jnp.zeros((out_channels,), jnp.float32),
        "w2": 0.1 * jax.random.normal(k_w2, (out_channels, out_channels, 3, 3), jnp.float32),
        "b2": 0.1 * jax.random.normal(k_b2, (out_channels,), jnp.float32),
        "g2": jnp.ones((out_channels,), jnp.float32),
        "beta2": jnp.zeros((out_channels,), jnp.float32),
    }

    out = jax.block_until_ready(jax.jit(downscale_forward)(x, params))
    ref = jax.block_until_ready(_ref_forward(x, params))

    assert out.shape == (N, out_channels, H // 2, W // 2), out.shape
    assert jnp.allclose(out, ref, rtol=1e-4, atol=1e-4), float(jnp.max(jnp.abs(out - ref)))

    print("KERNEL_OK")
</pallas_src>

<mosaic_0001>
module attributes {stable_mosaic.version = 11 : i64} {
  func.func @_pool_kernel(%arg0: i32, %arg1: memref<2x2x8x8xf32, #tpu.memory_space<vmem>>, %arg2: memref<1x2x8x4xf32, #tpu.memory_space<vmem>>) attributes {dimension_semantics = [#tpu.dimension_semantics<parallel>], iteration_bounds = array<i64: 8>, scalar_prefetch = 0 : i64, scratch_operands = 0 : i64, tpu.core_type = #tpu.core_type<tc>, window_params = [{transform_indices = @transform_0, window_bounds = array<i64: 2, 2, 8, 8>}, {transform_indices = @transform_1, window_bounds = array<i64: 1, 2, 8, 4>}]} {
    %c0 = arith.constant 0 : index
    %c0_0 = arith.constant 0 : index
    %c0_1 = arith.constant 0 : index
    %c0_2 = arith.constant 0 : index
    %0 = vector.load %arg1[%c0, %c0_0, %c0_1, %c0_2] : memref<2x2x8x8xf32, #tpu.memory_space<vmem>>, vector<1x2x8x8xf32>
    %1 = vector.shape_cast %0 : vector<1x2x8x8xf32> to vector<2x8x8xf32>
    %c1 = arith.constant 1 : index
    %c0_3 = arith.constant 0 : index
    %c0_4 = arith.constant 0 : index
    %c0_5 = arith.constant 0 : index
    %2 = vector.load %arg1[%c1, %c0_3, %c0_4, %c0_5] : memref<2x2x8x8xf32, #tpu.memory_space<vmem>>, vector<1x2x8x8xf32>
    %3 = vector.shape_cast %2 : vector<1x2x8x8xf32> to vector<2x8x8xf32>
    %4 = arith.maximumf %1, %3 : vector<2x8x8xf32>
    %5 = vector.extract_strided_slice %4 {offsets = [0, 0, 0], sizes = [2, 8, 4], strides = [1, 1, 1]} : vector<2x8x8xf32> to vector<2x8x4xf32>
    %6 = vector.extract_strided_slice %4 {offsets = [0, 0, 4], sizes = [2, 8, 4], strides = [1, 1, 1]} : vector<2x8x8xf32> to vector<2x8x4xf32>
    %7 = arith.maximumf %5, %6 : vector<2x8x4xf32>
    %c0_6 = arith.constant 0 : index
    %c0_7 = arith.constant 0 : index
    %c0_8 = arith.constant 0 : index
    %c0_9 = arith.constant 0 : index
    %8 = vector.load %arg2[%c0_6, %c0_7, %c0_8, %c0_9] : memref<1x2x8x4xf32, #tpu.memory_space<vmem>>, vector<1x2x8x4xf32>
    %9 = vector.shape_cast %8 : vector<1x2x8x4xf32> to vector<2x8x4xf32>
    %10 = vector.shape_cast %7 : vector<2x8x4xf32> to vector<1x2x8x4xf32>
    tpu.vector_store %arg2[%c0_6, %c0_7, %c0_8, %c0_9], %10 {strides = array<i32>} : memref<1x2x8x4xf32, #tpu.memory_space<vmem>>, vector<1x2x8x4xf32>,
    return
  }
  func.func @transform_0(%arg0: i32) -> (i32, i32, i32, i32) {
    %c0_i32 = arith.constant 0 : i32
    %c0_i32_0 = arith.constant 0 : i32
    %c0_i32_1 = arith.constant 0 : i32
    %c0_i32_2 = arith.constant 0 : i32
    return %arg0, %c0_i32, %c0_i32_0, %c0_i32_1 : i32, i32, i32, i32
  }
  func.func @transform_1(%arg0: i32) -> (i32, i32, i32, i32) {
    %c0_i32 = arith.constant 0 : i32
    %c0_i32_0 = arith.constant 0 : i32
    %c0_i32_1 = arith.constant 0 : i32
    %c0_i32_2 = arith.constant 0 : i32
    return %arg0, %c0_i32, %c0_i32_0, %c0_i32_1 : i32, i32, i32, i32
  }
}

module attributes {stable_mosaic.version = 11 : i64} {
  func.func @_conv_row_kernel(%arg0: i32, %arg1: memref<1x2x10x128xf32, #tpu.memory_space<vmem>>, %arg2: memref<1x2x10x128xf32, #tpu.memory_space<vmem>>, %arg3: memref<1x2x10x128xf32, #tpu.memory_space<vmem>>, %arg4: memref<9x128x128xf32, #tpu.memory_space<vmem>>, %arg5: memref<1x16x128xf32, #tpu.memory_space<vmem>>, %arg6: memref<1x2x128xf32, #tpu.memory_space<vmem>>) attributes {dimension_semantics = [#tpu.dimension_semantics<parallel>], iteration_bounds = array<i64: 8>, scalar_prefetch = 0 : i64, scratch_operands = 0 : i64, tpu.core_type = #tpu.core_type<tc>, window_params = [{transform_indices = @transform_0, window_bounds = array<i64: 1, 2, 10, 128>}, {transform_indices = @transform_1, window_bounds = array<i64: 1, 2, 10, 128>}, {transform_indices = @transform_2, window_bounds = array<i64: 1, 2, 10, 128>}, {pipeline_mode = #tpu.pipeline_mode<synchronous>, transform_indices = @transform_3, window_bounds = array<i64: 9, 128, 128>}, {transform_indices = @transform_4, window_bounds = array<i64: 1, 16, 128>}, {transform_indices = @transform_5, window_bounds = array<i64: 1, 2, 128>}]} {
    %cst = arith.constant 0.000000e+00 : f32
    %0 = vector.broadcast %cst : f32 to vector<16x128xf32>
    %c0 = arith.constant 0 : index
    %c0_0 = arith.constant 0 : index
    %c0_1 = arith.constant 0 : index
    %c0_2 = arith.constant 0 : index
    %1 = vector.load %arg1[%c0, %c0_0, %c0_1, %c0_2] : memref<1x2x10x128xf32, #tpu.memory_space<vmem>>, vector<1x2x10x128xf32>
    %2 = vector.shape_cast %1 : vector<1x2x10x128xf32> to vector<2x10x128xf32>
    %3 = vector.extract_strided_slice %2 {offsets = [0, 0, 0], sizes = [2, 8, 128], strides = [1, 1, 1]} : vector<2x10x128xf32> to vector<2x8x128xf32>
    %4 = vector.shape_cast %3 : vector<2x8x128xf32> to vector<16x128xf32>
    %c0_3 = arith.constant 0 : index
    %c0_4 = arith.constant 0 : index
    %c0_5 = arith.constant 0 : index
    %5 = vector.load %arg4[%c0_3, %c0_4, %c0_5] : memref<9x128x128xf32, #tpu.memory_space<vmem>>, vector<1x128x128xf32>
    %6 = vector.shape_cast %5 : vector<1x128x128xf32> to vector<128x128xf32>
    %cst_6 = arith.constant dense<0.000000e+00> : vector<16x128xf32>
    %7 = tpu.matmul %4, %6, %cst_6 {dimension_numbers = #tpu.dot_dimension_numbers<[1], [0], [0], [1], [0, 0, 1, 1], [], []>} : vector<16x128xf32>, vector<128x128xf32>, vector<16x128xf32> -> vector<16x128xf32>
    %8 = arith.addf %0, %7 : vector<16x128xf32>
    %9 = vector.extract_strided_slice %2 {offsets = [0, 1, 0], sizes = [2, 8, 128], strides = [1, 1, 1]} : vector<2x10x128xf32> to vector<2x8x128xf32>
    %10 = vector.shape_cast %9 : vector<2x8x128xf32> to vector<16x128xf32>
    %c1 = arith.constant 1 : index
    %c0_7 = arith.constant 0 : index
    %c0_8 = arith.constant 0 : index
    %11 = vector.load %arg4[%c1, %c0_7, %c0_8] : memref<9x128x128xf32, #tpu.memory_space<vmem>>, vector<1x128x128xf32>
    %12 = vector.shape_cast %11 : vector<1x128x128xf32> to vector<128x128xf32>
    %cst_9 = arith.constant dense<0.000000e+00> : vector<16x128xf32>
    %13 = tpu.matmul %10, %12, %cst_9 {dimension_numbers = #tpu.dot_dimension_numbers<[1], [0], [0], [1], [0, 0, 1, 1], [], []>} : vector<16x128xf32>, vector<128x128xf32>, vector<16x128xf32> -> vector<16x128xf32>
    %14 = arith.addf %8, %13 : vector<16x128xf32>
    %15 = vector.extract_strided_slice %2 {offsets = [0, 2, 0], sizes = [2, 8, 128], strides = [1, 1, 1]} : vector<2x10x128xf32> to vector<2x8x128xf32>
    %16 = vector.shape_cast %15 : vector<2x8x128xf32> to vector<16x128xf32>
    %c2 = arith.constant 2 : index
    %c0_10 = arith.constant 0 : index
    %c0_11 = arith.constant 0 : index
    %17 = vector.load %arg4[%c2, %c0_10, %c0_11] : memref<9x128x128xf32, #tpu.memory_space<vmem>>, vector<1x128x128xf32>
    %18 = vector.shape_cast %17 : vector<1x128x128xf32> to vector<128x128xf32>
    %cst_12 = arith.constant dense<0.000000e+00> : vector<16x128xf32>
    %19 = tpu.matmul %16, %18, %cst_12 {dimension_numbers = #tpu.dot_dimension_numbers<[1], [0], [0], [1], [0, 0, 1, 1], [], []>} : vector<16x128xf32>, vector<128x128xf32>, vector<16x128xf32> -> vector<16x128xf32>
    %20 = arith.addf %14, %19 : vector<16x128xf32>
    %c0_13 = arith.constant 0 : index
    %c0_14 = arith.constant 0 : index
    %c0_15 = arith.constant 0 : index
    %c0_16 = arith.constant 0 : index
    %21 = vector.load %arg2[%c0_13, %c0_14, %c0_15, %c0_16] : memref<1x2x10x128xf32, #tpu.memory_space<vmem>>, vector<1x2x10x128xf32>
    %22 = vector.shape_cast %21 : vector<1x2x10x128xf32> to vector<2x10x128xf32>
    %23 = vector.extract_strided_slice %22 {offsets = [0, 0, 0], sizes = [2, 8, 128], strides = [1, 1, 1]} : vector<2x10x128xf32> to vector<2x8x128xf32>
    %24 = vector.shape_cast %23 : vector<2x8x128xf32> to vector<16x128xf32>
    %c3 = arith.constant 3 : index
    %c0_17 = arith.constant 0 : index
    %c0_18 = arith.constant 0 : index
    %25 = vector.load %arg4[%c3, %c0_17, %c0_18] : memref<9x128x128xf32, #tpu.memory_space<vmem>>, vector<1x128x128xf32>
    %26 = vector.shape_cast %25 : vector<1x128x128xf32> to vector<128x128xf32>
    %cst_19 = arith.constant dense<0.000000e+00> : vector<16x128xf32>
    %27 = tpu.matmul %24, %26, %cst_19 {dimension_numbers = #tpu.dot_dimension_numbers<[1], [0], [0], [1], [0, 0, 1, 1], [], []>} : vector<16x128xf32>, vector<128x128xf32>, vector<16x128xf32> -> vector<16x128xf32>
    %28 = arith.addf %20, %27 : vector<16x128xf32>
    %29 = vector.extract_strided_slice %22 {offsets = [0, 1, 0], sizes = [2, 8, 128], strides = [1, 1, 1]} : vector<2x10x128xf32> to vector<2x8x128xf32>
    %30 = vector.shape_cast %29 : vector<2x8x128xf32> to vector<16x128xf32>
    %c4 = arith.constant 4 : index
    %c0_20 = arith.constant 0 : index
    %c0_21 = arith.constant 0 : index
    %31 = vector.load %arg4[%c4, %c0_20, %c0_21] : memref<9x128x128xf32, #tpu.memory_space<vmem>>, vector<1x128x128xf32>
    %32 = vector.shape_cast %31 : vector<1x128x128xf32> to vector<128x128xf32>
    %cst_22 = arith.constant dense<0.000000e+00> : vector<16x128xf32>
    %33 = tpu.matmul %30, %32, %cst_22 {dimension_numbers = #tpu.dot_dimension_numbers<[1], [0], [0], [1], [0, 0, 1, 1], [], []>} : vector<16x128xf32>, vector<128x128xf32>, vector<16x128xf32> -> vector<16x128xf32>
    %34 = arith.addf %28, %33 : vector<16x128xf32>
    %35 = vector.extract_strided_slice %22 {offsets = [0, 2, 0], sizes = [2, 8, 128], strides = [1, 1, 1]} : vector<2x10x128xf32> to vector<2x8x128xf32>
    %36 = vector.shape_cast %35 : vector<2x8x128xf32> to vector<16x128xf32>
    %c5 = arith.constant 5 : index
    %c0_23 = arith.constant 0 : index
    %c0_24 = arith.constant 0 : index
    %37 = vector.load %arg4[%c5, %c0_23, %c0_24] : memref<9x128x128xf32, #tpu.memory_space<vmem>>, vector<1x128x128xf32>
    %38 = vector.shape_cast %37 : vector<1x128x128xf32> to vector<128x128xf32>
    %cst_25 = arith.constant dense<0.000000e+00> : vector<16x128xf32>
    %39 = tpu.matmul %36, %38, %cst_25 {dimension_numbers = #tpu.dot_dimension_numbers<[1], [0], [0], [1], [0, 0, 1, 1], [], []>} : vector<16x128xf32>, vector<128x128xf32>, vector<16x128xf32> -> vector<16x128xf32>
    %40 = arith.addf %34, %39 : vector<16x128xf32>
    %c0_26 = arith.constant 0 : index
    %c0_27 = arith.constant 0 : index
    %c0_28 = arith.constant 0 : index
    %c0_29 = arith.constant 0 : index
    %41 = vector.load %arg3[%c0_26, %c0_27, %c0_28, %c0_29] : memref<1x2x10x128xf32, #tpu.memory_space<vmem>>, vector<1x2x10x128xf32>
    %42 = vector.shape_cast %41 : vector<1x2x10x128xf32> to vector<2x10x128xf32>
    %43 = vector.extract_strided_slice %42 {offsets = [0, 0, 0], sizes = [2, 8, 128], strides = [1, 1, 1]} : vector<2x10x128xf32> to vector<2x8x128xf32>
    %44 = vector.shape_cast %43 : vector<2x8x128xf32> to vector<16x128xf32>
    %c6 = arith.constant 6 : index
    %c0_30 = arith.constant 0 : index
    %c0_31 = arith.constant 0 : index
    %45 = vector.load %arg4[%c6, %c0_30, %c0_31] : memref<9x128x128xf32, #tpu.memory_space<vmem>>, vector<1x128x128xf32>
    %46 = vector.shape_cast %45 : vector<1x128x128xf32> to vector<128x128xf32>
    %cst_32 = arith.constant dense<0.000000e+00> : vector<16x128xf32>
    %47 = tpu.matmul %44, %46, %cst_32 {dimension_numbers = #tpu.dot_dimension_numbers<[1], [0], [0], [1], [0, 0, 1, 1], [], []>} : vector<16x128xf32>, vector<128x128xf32>, vector<16x128xf32> -> vector<16x128xf32>
    %48 = arith.addf %40, %47 : vector<16x128xf32>
    %49 = vector.extract_strided_slice %42 {offsets = [0, 1, 0], sizes = [2, 8, 128], strides = [1, 1, 1]} : vector<2x10x128xf32> to vector<2x8x128xf32>
    %50 = vector.shape_cast %49 : vector<2x8x128xf32> to vector<16x128xf32>
    %c7 = arith.constant 7 : index
    %c0_33 = arith.constant 0 : index
    %c0_34 = arith.constant 0 : index
    %51 = vector.load %arg4[%c7, %c0_33, %c0_34] : memref<9x128x128xf32, #tpu.memory_space<vmem>>, vector<1x128x128xf32>
    %52 = vector.shape_cast %51 : vector<1x128x128xf32> to vector<128x128xf32>
    %cst_35 = arith.constant dense<0.000000e+00> : vector<16x128xf32>
    %53 = tpu.matmul %50, %52, %cst_35 {dimension_numbers = #tpu.dot_dimension_numbers<[1], [0], [0], [1], [0, 0, 1, 1], [], []>} : vector<16x128xf32>, vector<128x128xf32>, vector<16x128xf32> -> vector<16x128xf32>
    %54 = arith.addf %48, %53 : vector<16x128xf32>
    %55 = vector.extract_strided_slice %42 {offsets = [0, 2, 0], sizes = [2, 8, 128], strides = [1, 1, 1]} : vector<2x10x128xf32> to vector<2x8x128xf32>
    %56 = vector.shape_cast %55 : vector<2x8x128xf32> to vector<16x128xf32>
    %c8 = arith.constant 8 : index
    %c0_36 = arith.constant 0 : index
    %c0_37 = arith.constant 0 : index
    %57 = vector.load %arg4[%c8, %c0_36, %c0_37] : memref<9x128x128xf32, #tpu.memory_space<vmem>>, vector<1x128x128xf32>
    %58 = vector.shape_cast %57 : vector<1x128x128xf32> to vector<128x128xf32>
    %cst_38 = arith.constant dense<0.000000e+00> : vector<16x128xf32>
    %59 = tpu.matmul %56, %58, %cst_38 {dimension_numbers = #tpu.dot_dimension_numbers<[1], [0], [0], [1], [0, 0, 1, 1], [], []>} : vector<16x128xf32>, vector<128x128xf32>, vector<16x128xf32> -> vector<16x128xf32>
    %60 = arith.addf %54, %59 : vector<16x128xf32>
    %c0_39 = arith.constant 0 : index
    %c0_40 = arith.constant 0 : index
    %c0_41 = arith.constant 0 : index
    %61 = vector.load %arg5[%c0_39, %c0_40, %c0_41] : memref<1x16x128xf32, #tpu.memory_space<vmem>>, vector<1x16x128xf32>
    %62 = vector.shape_cast %61 : vector<1x16x128xf32> to vector<16x128xf32>
    %63 = vector.shape_cast %60 : vector<16x128xf32> to vector<1x16x128xf32>
    tpu.vector_store %arg5[%c0_39, %c0_40, %c0_41], %63 {strides = array<i32>} : memref<1x16x128xf32, #tpu.memory_space<vmem>>, vector<1x16x128xf32>,
    %cst_42 = arith.constant dense<0.000000e+00> : vector<128xf32>
    %64 = vector.multi_reduction <add>, %60, %cst_42 [0] : vector<16x128xf32> to vector<128xf32>
    %65 = vector.shape_cast %64 : vector<128xf32> to vector<1x128xf32>
    %66 = arith.mulf %60, %60 : vector<16x128xf32>
    %cst_43 = arith.constant dense<0.000000e+00> : vector<128xf32>
    %67 = vector.multi_reduction <add>, %66, %cst_43 [0] : vector<16x128xf32> to vector<128xf32>
    %68 = vector.shape_cast %67 : vector<128xf32> to vector<1x128xf32>
    %69 = tpu.concatenate %65, %68 in 0 : vector<1x128xf32>, vector<1x128xf32> -> vector<2x128xf32>
    %c0_44 = arith.constant 0 : index
    %c0_45 = arith.constant 0 : index
    %c0_46 = arith.constant 0 : index
    %70 = vector.load %arg6[%c0_44, %c0_45, %c0_46] : memref<1x2x128xf32, #tpu.memory_space<vmem>>, vector<1x2x128xf32>
    %71 = vector.shape_cast %70 : vector<1x2x128xf32> to vector<2x128xf32>
    %72 = vector.shape_cast %69 : vector<2x128xf32> to vector<1x2x128xf32>
    tpu.vector_store %arg6[%c0_44, %c0_45, %c0_46], %72 {strides = array<i32>} : memref<1x2x128xf32, #tpu.memory_space<vmem>>, vector<1x2x128xf32>,
    return
  }
  func.func @transform_0(%arg0: i32) -> (i32, i32, i32, i32) {
    %c0_i32 = arith.constant 0 : i32
    %0 = arith.addi %arg0, %c0_i32 : i32
    %c0_i32_0 = arith.constant 0 : i32
    %c0_i32_1 = arith.constant 0 : i32
    %c0_i32_2 = arith.constant 0 : i32
    %c0_i32_3 = arith.constant 0 : i32
    return %0, %c0_i32_0, %c0_i32_1, %c0_i32_2 : i32, i32, i32, i32
  }
  func.func @transform_1(%arg0: i32) -> (i32, i32, i32, i32) {
    %c1_i32 = arith.constant 1 : i32
    %0 = arith.addi %arg0, %c1_i32 : i32
    %c0_i32 = arith.constant 0 : i32
    %c0_i32_0 = arith.constant 0 : i32
    %c0_i32_1 = arith.constant 0 : i32
    %c0_i32_2 = arith.constant 0 : i32
    return %0, %c0_i32, %c0_i32_0, %c0_i32_1 : i32, i32, i32, i32
  }
  func.func @transform_2(%arg0: i32) -> (i32, i32, i32, i32) {
    %c2_i32 = arith.constant 2 : i32
    %0 = arith.addi %arg0, %c2_i32 : i32
    %c0_i32 = arith.constant 0 : i32
    %c0_i32_0 = arith.constant 0 : i32
    %c0_i32_1 = arith.constant 0 : i32
    %c0_i32_2 = arith.constant 0 : i32
    return %0, %c0_i32, %c0_i32_0, %c0_i32_1 : i32, i32, i32, i32
  }
  func.func @transform_3(%arg0: i32) -> (i32, i32, i32) {
    %c0_i32 = arith.constant 0 : i32
    %c0_i32_0 = arith.constant 0 : i32
    %c0_i32_1 = arith.constant 0 : i32
    %c0_i32_2 = arith.constant 0 : i32
    return %c0_i32, %c0_i32_0, %c0_i32_1 : i32, i32, i32
  }
  func.func @transform_4(%arg0: i32) -> (i32, i32, i32) {
    %c0_i32 = arith.constant 0 : i32
    %c0_i32_0 = arith.constant 0 : i32
    %c0_i32_1 = arith.constant 0 : i32
    return %arg0, %c0_i32, %c0_i32_0 : i32, i32, i32
  }
  func.func @transform_5(%arg0: i32) -> (i32, i32, i32) {
    %c0_i32 = arith.constant 0 : i32
    %c0_i32_0 = arith.constant 0 : i32
    %c0_i32_1 = arith.constant 0 : i32
    return %arg0, %c0_i32, %c0_i32_0 : i32, i32, i32
  }
}

module attributes {stable_mosaic.version = 11 : i64} {
  func.func @_bn_relu_kernel(%arg0: i32, %arg1: memref<128x128xf32, #tpu.memory_space<vmem>>, %arg2: memref<1x128xf32, #tpu.memory_space<vmem>>, %arg3: memref<1x128xf32, #tpu.memory_space<vmem>>, %arg4: memref<128x128xf32, #tpu.memory_space<vmem>>) attributes {dimension_semantics = [#tpu.dimension_semantics<parallel>], iteration_bounds = array<i64: 1>, scalar_prefetch = 0 : i64, scratch_operands = 0 : i64, tpu.core_type = #tpu.core_type<tc>, window_params = [{transform_indices = @transform_0, window_bounds = array<i64: 128, 128>}, {pipeline_mode = #tpu.pipeline_mode<synchronous>, transform_indices = @transform_1, window_bounds = array<i64: 1, 128>}, {pipeline_mode = #tpu.pipeline_mode<synchronous>, transform_indices = @transform_2, window_bounds = array<i64: 1, 128>}, {transform_indices = @transform_3, window_bounds = array<i64: 128, 128>}]} {
    %c0 = arith.constant 0 : index
    %c0_0 = arith.constant 0 : index
    %0 = vector.load %arg1[%c0, %c0_0] : memref<128x128xf32, #tpu.memory_space<vmem>>, vector<128x128xf32>
    %c0_1 = arith.constant 0 : index
    %c0_2 = arith.constant 0 : index
    %1 = vector.load %arg2[%c0_1, %c0_2] : memref<1x128xf32, #tpu.memory_space<vmem>>, vector<1x128xf32>
    %2 = vector.broadcast %1 : vector<1x128xf32> to vector<128x128xf32>
    %3 = arith.mulf %0, %2 : vector<128x128xf32>
    %c0_3 = arith.constant 0 : index
    %c0_4 = arith.constant 0 : index
    %4 = vector.load %arg3[%c0_3, %c0_4] : memref<1x128xf32, #tpu.memory_space<vmem>>, vector<1x128xf32>
    %5 = vector.broadcast %4 : vector<1x128xf32> to vector<128x128xf32>
    %6 = arith.addf %3, %5 : vector<128x128xf32>
    %cst = arith.constant 0.000000e+00 : f32
    %7 = vector.broadcast %cst : f32 to vector<128x128xf32>
    %8 = arith.maximumf %6, %7 : vector<128x128xf32>
    %c0_5 = arith.constant 0 : index
    %c0_6 = arith.constant 0 : index
    %9 = vector.load %arg4[%c0_5, %c0_6] : memref<128x128xf32, #tpu.memory_space<vmem>>, vector<128x128xf32>
    tpu.vector_store %arg4[%c0_5, %c0_6], %8 {strides = array<i32>} : memref<128x128xf32, #tpu.memory_space<vmem>>, vector<128x128xf32>,
    return
  }
  func.func @transform_0(%arg0: i32) -> (i32, i32) {
    %c0_i32 = arith.constant 0 : i32
    %c0_i32_0 = arith.constant 0 : i32
    return %arg0, %c0_i32 : i32, i32
  }
  func.func @transform_1(%arg0: i32) -> (i32, i32) {
    %c0_i32 = arith.constant 0 : i32
    %c0_i32_0 = arith.constant 0 : i32
    %c0_i32_1 = arith.constant 0 : i32
    return %c0_i32, %c0_i32_0 : i32, i32
  }
  func.func @transform_2(%arg0: i32) -> (i32, i32) {
    %c0_i32 = arith.constant 0 : i32
    %c0_i32_0 = arith.constant 0 : i32
    %c0_i32_1 = arith.constant 0 : i32
    return %c0_i32, %c0_i32_0 : i32, i32
  }
  func.func @transform_3(%arg0: i32) -> (i32, i32) {
    %c0_i32 = arith.constant 0 : i32
    %c0_i32_0 = arith.constant 0 : i32
    return %arg0, %c0_i32 : i32, i32
  }
}

</mosaic_0001>

<bundles_post_ra>
// kernel: downscale_forward.5
= control target key start
LH: loop header
LB: loop body
LE: loop exit
PB: predicated region body
PF: predicated region fallthrough
CT: control target
= control target key end

     0   :  { %s241_s6 = smov 0   ;;  %s258_s0 = inlined_call_operand.vmem [shape: f32[16,2,8,8], index: 0, kind: input, shape index: {}]   ;;  %s259_s1 = inlined_call_operand.vmem [shape: f32[8,2,8,4], index: 1, kind: output, shape index: {}]  }
   0x1 LB: > { %s197_s7 = sadd.s32 4294967295, %s228_s6   ;;  %p201_p0 = scmp.ge.s32.totalorder %s228_s6, 1  ;;  %s228_s6 = sphi %s241_s6, %s11_s6  }
   0x2   : > { %p89_p1 = scmp.lt.s32.totalorder %s228_s6, 9 }
   0x4   : > { %p90_p2 = pnand %p201_p0, %p89_p1 }
   0x5   : > { %s202_s8 = sshll.u32 (!%p90_p2), %s197_s7, 1  ;;  %s230_s13 = smov (!%p90_p2), 124   ;;  %vm139_vm0 = vcmask (!%p90_p2), 31744  }
   0x6   : > { %93 = sbr.rel (%p90_p2) target bundleno = 141 (0x8d), region = 24  ;;  %p111_p3 = scmp.lt.s32.totalorder (!%p90_p2), %s202_s8, 15 }
   0x7   : > { %p117_p4 = scmp.lt.s32.totalorder (!%p90_p2), %s197_s7, 7 }
   0xd   : > { %s261_s8 = smov (!%p111_p3, %s202_s8), 15  ;;  %s263_s7 = smov (!%p117_p4, %s197_s7), 7 }
   0xe   : > { %s211_s9 = sshll.u32 %s261_s8, 4  ;;  %s212_s14 = sshll.u32 %s263_s7, 4 }
   0xf   : > { %s115_s12 = scalar_lea.vmem %s258_s0, %s211_s9  ;;  %s121_s17 = scalar_lea.vmem %s259_s1, %s212_s14 }
  0x10   : > { %v122_v0 = vld [vmem:[%s115_s12] sm:$0xff]  ;;  %v207_v1 = vld [vmem:[%s115_s12 + $0x10] sm:$0xff]  ;;  %v123_v2 = vld [vmem:[%s115_s12 + $0x8] sm:$0xff] }
  0x11   : > { %v127_v3 = vmax.f32 %v122_v0, %v207_v1  ;;  %v208_v4 = vld [vmem:[%s115_s12 + $0x18] sm:$0xff] }
  0x12   : > { %v128_v5 = vmax.f32 %v123_v2, %v208_v4 }
  0x13   : > { %131 = vrot.lane.b32.xlu0 %v127_v3, %s230_s13 }
  0x17   : > { %133 = vrot.lane.b32.xlu0 %v128_v5, %s230_s13 }
  0x85   : > { %v132_v6 = vpop.permute.xlu0 %131 }
  0x86   : > { %v137_v7 = vmax.f32 %v127_v3, %v132_v6 }
  0x88   : > { %140 = vst.msk [vmem:[%s121_s17] sm:$0xff] %vm139_vm0, %v137_v7 }
  0x89   : > { %v134_v8 = vpop.permute.xlu0 %133 }
  0x8a   : > { %v138_v9 = vmax.f32 %v128_v5, %v134_v8 }
  0x8c   : > { %141 = vst.msk [vmem:[%s121_s17 + $0x8] sm:$0xff] %vm139_vm0, %v138_v9 }
  0x8d PF: > { %s11_s6 = sadd.s32 1, %s228_s6  }
  0x8e   : > { %p8_p5 = scmp.ge.s32.totalorder %s11_s6, 10  }
  0x90   :  { %10 = sbr.rel (!%p8_p5) target bundleno = 1 (0x1), region = 55 }

// kernel: downscale_forward.7
= control target key start
LH: loop header
LB: loop body
LE: loop exit
PB: predicated region body
PF: predicated region fallthrough
CT: control target
= control target key end

     0   :  { %s254_s0 = inlined_call_operand.vmem [shape: f32[128,128], index: 0, kind: input, shape index: {}]   ;;  %s255_s1 = inlined_call_operand.vmem [shape: f32[1,128], index: 1, kind: input, shape index: {}]   ;;  %s256_s2 = inlined_call_operand.vmem [shape: f32[1,128], index: 2, kind: input, shape index: {}]   ;;  %s257_s3 = inlined_call_operand.vmem [shape: f32[128,128], index: 3, kind: output, shape index: {}]  }
   0x1   :  { %v14_v0 = vld [vmem:[%s254_s0] sm:$0xff]  ;;  %v15_v4 = vld [vmem:[%s254_s0 + $0x8] sm:$0xff]  ;;  %v16_v5 = vld [vmem:[%s254_s0 + $0x10] sm:$0xff] }
   0x2   :  { %v112_v1 = vld [vmem:[%s255_s1] ss:$0 sm:$0xff]  ;;  %v17_v6 = vld [vmem:[%s254_s0 + $0x18] sm:$0xff]  ;;  %v19_v11 = vld [vmem:[%s254_s0 + $0x28] sm:$0xff] }
   0x3   :  { %v143_v2 = vld [vmem:[%s256_s2] ss:$0 sm:$0xff]  ;;  %v37_v3 = vmul.f32 %v112_v1, %v14_v0  ;;  %v38_v7 = vmul.f32 %v112_v1, %v15_v4  ;;  %v39_v8 = vmul.f32 %v112_v1, %v16_v5  ;;  %v40_v9 = vmul.f32 %v112_v1, %v17_v6  ;;  %v20_v12 = vld [vmem:[%s254_s0 + $0x30] sm:$0xff]  ;;  %v21_v17 = vld [vmem:[%s254_s0 + $0x38] sm:$0xff] }
   0x4   :  { %v18_v10 = vld [vmem:[%s254_s0 + $0x20] sm:$0xff]  ;;  %v42_v15 = vmul.f32 %v112_v1, %v19_v11  ;;  %v43_v16 = vmul.f32 %v112_v1, %v20_v12  ;;  %v44_v21 = vmul.f32 %v112_v1, %v21_v17  ;;  %v23_v27 = vld [vmem:[%s254_s0 + $0x48] sm:$0xff]  ;;  %v24_v28 = vld [vmem:[%s254_s0 + $0x50] sm:$0xff] }
   0x5   :  { %v60_v13 = vadd.f32 %v143_v2, %v37_v3  ;;  %v41_v14 = vmul.f32 %v112_v1, %v18_v10  ;;  %v61_v18 = vadd.f32 %v143_v2, %v38_v7  ;;  %v62_v19 = vadd.f32 %v143_v2, %v39_v8  ;;  %v22_v22 = vld [vmem:[%s254_s0 + $0x40] sm:$0xff]  ;;  %v25_v29 = vld [vmem:[%s254_s0 + $0x58] sm:$0xff]  ;;  %v27_v35 = vld [vmem:[%s254_s0 + $0x68] sm:$0xff] }
   0x6   :  { %v63_v20 = vadd.f32 %v143_v2, %v40_v9  ;;  %v65_v25 = vadd.f32 %v143_v2, %v42_v15  ;;  %v66_v26 = vadd.f32 %v143_v2, %v43_v16  ;;  %v67_v33 = vadd.f32 %v143_v2, %v44_v21  ;;  %v26_v34 = vld [vmem:[%s254_s0 + $0x60] sm:$0xff]  ;;  %v28_v36 = vld [vmem:[%s254_s0 + $0x70] sm:$0xff]  ;;  %v29_v41 = vld [vmem:[%s254_s0 + $0x78] sm:$0xff] }
   0x7   :  { %v76_v23 = vmax.f32 %v60_v13, 0.0  ;;  %v64_v24 = vadd.f32 %v143_v2, %v41_v14  ;;  %v77_v30 = vmax.f32 %v61_v18, 0.0  ;;  %v78_v31 = vmax.f32 %v62_v19, 0.0 }
   0x8   :  { %v79_v32 = vmax.f32 %v63_v20, 0.0  ;;  %v81_v38 = vmax.f32 %v65_v25, 0.0  ;;  %v82_v39 = vmax.f32 %v66_v26, 0.0  ;;  %v45_v40 = vmul.f32 %v112_v1, %v22_v22 }
   0x9   :  { %92 = vst [vmem:[%s257_s3] sm:$0xff] %v76_v23  ;;  %v80_v37 = vmax.f32 %v64_v24, 0.0  ;;  %93 = vst [vmem:[%s257_s3 + $0x8] sm:$0xff] %v77_v30  ;;  %v83_v42 = vmax.f32 %v67_v33, 0.0  ;;  %v46_v43 = vmul.f32 %v112_v1, %v23_v27  ;;  %v47_v44 = vmul.f32 %v112_v1, %v24_v28 }
   0xa   :  { %94 = vst [vmem:[%s257_s3 + $0x10] sm:$0xff] %v78_v31  ;;  %95 = vst [vmem:[%s257_s3 + $0x18] sm:$0xff] %v79_v32  ;;  %v48_v45 = vmul.f32 %v112_v1, %v25_v29  ;;  %v68_v46 = vadd.f32 %v143_v2, %v45_v40  ;;  %v49_v47 = vmul.f32 %v112_v1, %v26_v34 }
   0xb   :  { %96 = vst [vmem:[%s257_s3 + $0x20] sm:$0xff] %v80_v37  ;;  %97 = vst [vmem:[%s257_s3 + $0x28] sm:$0xff] %v81_v38  ;;  %v50_v48 = vmul.f32 %v112_v1, %v27_v35  ;;  %v51_v49 = vmul.f32 %v112_v1, %v28_v36  ;;  %v69_v50 = vadd.f32 %v143_v2, %v46_v43 }
   0xc   :  { %98 = vst [vmem:[%s257_s3 + $0x30] sm:$0xff] %v82_v39  ;;  %99 = vst [vmem:[%s257_s3 + $0x38] sm:$0xff] %v83_v42  ;;  %v70_v51 = vadd.f32 %v143_v2, %v47_v44  ;;  %v71_v52 = vadd.f32 %v143_v2, %v48_v45  ;;  %v52_v53 = vmul.f32 %v112_v1, %v29_v41  ;;  %v84_v54 = vmax.f32 %v68_v46, 0.0 }
   0xd   :  { %v72_v55 = vadd.f32 %v143_v2, %v49_v47  ;;  %v73_v56 = vadd.f32 %v143_v2, %v50_v48  ;;  %v74_v57 = vadd.f32 %v143_v2, %v51_v49  ;;  %v85_v58 = vmax.f32 %v69_v50, 0.0 }
   0xe   :  { %v86_v59 = vmax.f32 %v70_v51, 0.0  ;;  %v87_v60 = vmax.f32 %v71_v52, 0.0  ;;  %v75_v61 = vadd.f32 %v143_v2, %v52_v53  ;;  %100 = vst [vmem:[%s257_s3 + $0x40] sm:$0xff] %v84_v54 }
   0xf   :  { %v88_v62 = vmax.f32 %v72_v55, 0.0  ;;  %v89_v63 = vmax.f32 %v73_v56, 0.0  ;;  %v90_v0 = vmax.f32 %v74_v57, 0.0  ;;  %101 = vst [vmem:[%s257_s3 + $0x48] sm:$0xff] %v85_v58 }
  0x10   :  { %102 = vst [vmem:[%s257_s3 + $0x50] sm:$0xff] %v86_v59  ;;  %103 = vst [vmem:[%s257_s3 + $0x58] sm:$0xff] %v87_v60  ;;  %v91_v1 = vmax.f32 %v75_v61, 0.0 }
  0x11   :  { %104 = vst [vmem:[%s257_s3 + $0x60] sm:$0xff] %v88_v62  ;;  %105 = vst [vmem:[%s257_s3 + $0x68] sm:$0xff] %v89_v63 }
  0x12   :  { %106 = vst [vmem:[%s257_s3 + $0x70] sm:$0xff] %v90_v0  ;;  %107 = vst [vmem:[%s257_s3 + $0x78] sm:$0xff] %v91_v1 }

// kernel: downscale_forward.6
= control target key start
LH: loop header
LB: loop body
LE: loop exit
PB: predicated region body
PF: predicated region fallthrough
CT: control target
= control target key end

     0   :  { %s2311_s18 = smov 0   ;;  %s2856_s0 = inlined_call_operand.vmem [shape: f32[10,2,10,128], index: 0, kind: input, shape index: {}, may-alias: {0,1,2}]   ;;  %s2857_s1 = inlined_call_operand.vmem [shape: f32[10,2,10,128], index: 1, kind: input, shape index: {}, may-alias: {0,1,2}]   ;;  %s2858_s2 = inlined_call_operand.vmem [shape: f32[10,2,10,128], index: 2, kind: input, shape index: {}, may-alias: {0,1,2}]   ;;  %s2859_s3 = inlined_call_operand.vmem [shape: f32[9,128,128], index: 3, kind: input, shape index: {}]   ;;  %s2860_s4 = inlined_call_operand.vmem [shape: f32[8,16,128], index: 4, kind: output, shape index: {0}]   ;;  %s2861_s5 = inlined_call_operand.vmem [shape: f32[8,2,128], index: 5, kind: output, shape index: {1}]  }
   0x1 LB: > { %s2317_s19 = sadd.s32 4294967295, %s2279_s18   ;;  %p1340_p0 = scmp.ge.s32.totalorder %s2279_s18, 1  ;;  %s2279_s18 = sphi %s2311_s18, %s16_s18  }
   0x2   : > { %p218_p1 = scmp.lt.s32.totalorder %s2279_s18, 9 }
   0x4   : > { %p219_p2 = pnand %p1340_p0, %p218_p1 }
   0x5   : > { %v1350_v0 = vld [vmem:[%s2859_s3 + $0x80] sm:$0xff] (!%p219_p2)  ;;  %v1351_v1 = vld [vmem:[%s2859_s3 + $0x88] sm:$0xff] (!%p219_p2)  ;;  %p262_p3 = scmp.lt.s32.totalorder (!%p219_p2), %s2317_s19, 9  ;;  %s267_s26 = sadd.s32 (!%p219_p2), 1, %s2317_s19  ;;  %v1352_v5 = vld [vmem:[%s2859_s3 + $0x90] sm:$0xff] (!%p219_p2)  ;;  %vm314_vm0 = vcmask (!%p219_p2), 1046528  }
   0x6   : > { %222 = sbr.rel (%p219_p2) target bundleno = 402 (0x192), region = 36  ;;  %v1398_v2 = vld [vmem:[%s2859_s3 + $0x200] sm:$0xff] (!%p219_p2)  ;;  %v1961_v3 = vpack.c.bf16 (!%p219_p2), %v1351_v1, %v1350_v0  ;;  %v1399_v4 = vld [vmem:[%s2859_s3 + $0x208] sm:$0xff] (!%p219_p2)  ;;  %v1353_v6 = vld [vmem:[%s2859_s3 + $0x98] sm:$0xff] (!%p219_p2)  ;;  %p268_p4 = scmp.lt.s32.totalorder (!%p219_p2), %s267_s26, 9  ;;  %vm490_vm1 = vcmask (!%p219_p2), 1045504  }
   0x7   : > { %v2089_v7 = vpack.c.bf16 (!%p219_p2), %v1399_v4, %v1398_v2  ;;  %v1965_v8 = vpack.c.bf16 (!%p219_p2), %v1353_v6, %v1352_v5  ;;  %v1400_v9 = vld [vmem:[%s2859_s3 + $0x210] sm:$0xff] (!%p219_p2)  ;;  %v1401_v10 = vld [vmem:[%s2859_s3 + $0x218] sm:$0xff] (!%p219_p2)  ;;  %v1354_v11 = vld [vmem:[%s2859_s3 + $0xa0] sm:$0xff] (!%p219_p2)  ;;  %p281_p6 = scmp.lt.s32.totalorder (!%p219_p2), %s2317_s19, 7  ;;  %vm1223_vm2 = vcmask (!%p219_p2), 1040384  }
   0x8   : > { %1962 = vmatprep.subr.bf16.mxu1 (!%p219_p2), %v1961_v3  ;;  %v2093_v12 = vpack.c.bf16 (!%p219_p2), %v1401_v10, %v1400_v9  ;;  %v1355_v13 = vld [vmem:[%s2859_s3 + $0xa8] sm:$0xff] (!%p219_p2)  ;;  %v1402_v14 = vld [vmem:[%s2859_s3 + $0x220] sm:$0xff] (!%p219_p2)  ;;  %v1356_v18 = vld [vmem:[%s2859_s3 + $0xb0] sm:$0xff] (!%p219_p2) }
   0x9   : > { %v1403_v15 = vld [vmem:[%s2859_s3 + $0x228] sm:$0xff] (!%p219_p2)  ;;  %2090 = vmatprep.subr.bf16.mxu0 (!%p219_p2), %v2089_v7  ;;  %1964 = vmatpush3.bf16.msra.mxu1 (!%p219_p2), %v1961_v3  ;;  %v1969_v16 = vpack.c.bf16 (!%p219_p2), %v1355_v13, %v1354_v11  ;;  %v1357_v19 = vld [vmem:[%s2859_s3 + $0xb8] sm:$0xff] (!%p219_p2)  ;;  %v1404_v20 = vld [vmem:[%s2859_s3 + $0x230] sm:$0xff] (!%p219_p2) }
   0xa   : > { %2092 = vmatpush3.bf16.msra.mxu0 (!%p219_p2), %v2089_v7  ;;  %1966 = vmatprep.subr.bf16.mxu1 (!%p219_p2), %v1965_v8  ;;  %v2097_v17 = vpack.c.bf16 (!%p219_p2), %v1403_v15, %v1402_v14  ;;  %v1405_v21 = vld [vmem:[%s2859_s3 + $0x238] sm:$0xff] (!%p219_p2)  ;;  %v1973_v22 = vpack.c.bf16 (!%p219_p2), %v1357_v19, %v1356_v18  ;;  %v1358_v24 = vld [vmem:[%s2859_s3 + $0xc0] sm:$0xff] (!%p219_p2)  ;;  %v1359_v25 = vld [vmem:[%s2859_s3 + $0xc8] sm:$0xff] (!%p219_p2) }
   0xb   : > { %2094 = vmatprep.subr.bf16.mxu0 (!%p219_p2), %v2093_v12  ;;  %v2101_v23 = vpack.c.bf16 (!%p219_p2), %v1405_v21, %v1404_v20  ;;  %v1406_v27 = vld [vmem:[%s2859_s3 + $0x240] sm:$0xff] (!%p219_p2)  ;;  %v1407_v28 = vld [vmem:[%s2859_s3 + $0x248] sm:$0xff] (!%p219_p2)  ;;  %v1977_v34 = vpack.c.bf16 (!%p219_p2), %v1359_v25, %v1358_v24  ;;  %v1360_v38 = vld [vmem:[%s2859_s3 + $0xd0] sm:$0xff] (!%p219_p2) }
   0xc   : > { %v2105_v37 = vpack.c.bf16 (!%p219_p2), %v1407_v28, %v1406_v27  ;;  %v1361_v39 = vld [vmem:[%s2859_s3 + $0xd8] sm:$0xff] (!%p219_p2)  ;;  %v1408_v41 = vld [vmem:[%s2859_s3 + $0x250] sm:$0xff] (!%p219_p2)  ;;  %v1362_v45 = vld [vmem:[%s2859_s3 + $0xe0] sm:$0xff] (!%p219_p2) }
   0xd   : > { %s263_s14 = scalar_select %p262_p3, %s2317_s19, 9  ;;  %1968 = vmatpush3.bf16.msra.mxu1 %v1965_v8  ;;  %v1409_v42 = vld [vmem:[%s2859_s3 + $0x258] sm:$0xff]  ;;  %v1981_v44 = vpack.c.bf16 %v1361_v39, %v1360_v38  ;;  %v1363_v47 = vld [vmem:[%s2859_s3 + $0xe8] sm:$0xff]  ;;  %v1410_v50 = vld [vmem:[%s2859_s3 + $0x260] sm:$0xff] }
   0xe   : > { %s2863_s26 = smov (!%p268_p4, %s267_s26), 9  ;;  %2096 = vmatpush3.bf16.msra.mxu0 %v2093_v12  ;;  %1970 = vmatprep.subr.bf16.mxu1 %v1969_v16  ;;  %v2109_v46 = vpack.c.bf16 %v1409_v42, %v1408_v41  ;;  %v1411_v51 = vld [vmem:[%s2859_s3 + $0x268] sm:$0xff]  ;;  %v1985_v54 = vpack.c.bf16 %v1363_v47, %v1362_v45  ;;  %v1364_v57 = vld [vmem:[%s2859_s3 + $0xf0] sm:$0xff]  ;;  %v1365_v58 = vld [vmem:[%s2859_s3 + $0xf8] sm:$0xff] }
   0xf   : > { %s1480_s23 = sshll.u32 %s263_s14, 5  ;;  %s1481_s29 = sshll.u32 %s2863_s26, 5  ;;  %2098 = vmatprep.subr.bf16.mxu0 %v2097_v17  ;;  %v2113_v56 = vpack.c.bf16 %v1411_v51, %v1410_v50  ;;  %v1412_v59 = vld [vmem:[%s2859_s3 + $0x270] sm:$0xff]  ;;  %v1413_v60 = vld [vmem:[%s2859_s3 + $0x278] sm:$0xff]  ;;  %v1989_v61 = vpack.c.bf16 %v1365_v58, %v1364_v57  ;;  %v294_v62 = vld [vmem:[%s2859_s3] sm:$0xff] }
  0x10   : > { %s2375_s11 = scalar_lea.vmem %s2856_s0, %s1480_s23  ;;  %s2380_s13 = scalar_lea.vmem %s2857_s1, %s1481_s29  ;;  %v2117_v63 = vpack.c.bf16 %v1413_v60, %v1412_v59  ;;  %v295_v0 = vld [vmem:[%s2859_s3 + $0x8] sm:$0xff]  ;;  %v1414_v3 = vld [vmem:[%s2859_s3 + $0x280] sm:$0xff]  ;;  %v296_v11 = vld [vmem:[%s2859_s3 + $0x10] sm:$0xff] }
  0x11   : > { %v2389_v26 = vld [vmem:[%s2375_s11] sm:$0xff]  ;;  %v2398_v29 = vld [vmem:[%s2375_s11 + $0x8] sm:$0x3]  ;;  %1972 = vmatpush3.bf16.msra.mxu1 %v1969_v16  ;;  %v2431_v48 = vld [vmem:[%s2375_s11 + $0x10] sm:$0xff]  ;;  %v1993_v7 = vpack.c.bf16 %v295_v0, %v294_v62  ;;  %s274_s26 = sadd.s32 2, %s2317_s19  ;;  %s2867_s19 = smov (!%p281_p6, %s2317_s19), 7 }
  0x12   : > { %v315_v30 = vrot.slane %v2389_v26, 1  ;;  %v316_v31 = vrot.slane %v2398_v29, 1  ;;  %v2403_v32 = vld [vmem:[%s2380_s13] sm:$0xff]  ;;  %v2406_v33 = vld [vmem:[%s2380_s13 + $0x8] sm:$0x3]  ;;  %2100 = vmatpush3.bf16.msra.mxu0 %v2097_v17  ;;  %1974 = vmatprep.subr.bf16.mxu1 %v1973_v22  ;;  %v494_v52 = vrot.slane %v2431_v48, 2 }
  0x13   : > { %v695_v35 = vrot.slane %v2403_v32, 1  ;;  %v696_v36 = vrot.slane %v2406_v33, 1  ;;  %2102 = vmatprep.subr.bf16.mxu0 %v2101_v23  ;;  %v293_v49 = vld [vmem:[%s2375_s11 + $0x18] sm:$0x3]  ;;  %v2463_v1 = vld [vmem:[%s2380_s13 + $0x10] sm:$0xff]  ;;  %v1415_v4 = vld [vmem:[%s2859_s3 + $0x288] sm:$0xff] }
  0x14   : > { %v317_v40 = vsel %vm314_vm0, %v315_v30, %v316_v31  ;;  %v495_v53 = vrot.slane %v293_v49, 2  ;;  %v2466_v2 = vld [vmem:[%s2380_s13 + $0x18] sm:$0x3]  ;;  %v318_v5 = vrot.slane %v2431_v48, 1  ;;  %v319_v6 = vrot.slane %v293_v49, 1  ;;  %v1416_v13 = vld [vmem:[%s2859_s3 + $0x290] sm:$0xff] }
  0x15   : > { %1678 = vmatprep.mubr.f32.mxu1 %v317_v40  ;;  %v697_v43 = vsel %vm314_vm0, %v695_v35, %v696_v36  ;;  %1976 = vmatpush3.bf16.msra.mxu1 %v1973_v22  ;;  %v698_v8 = vrot.slane %v2463_v1, 1  ;;  %v699_v9 = vrot.slane %v2466_v2, 1  ;;  %v2121_v10 = vpack.c.bf16 %v1415_v4, %v1414_v3  ;;  %v297_v12 = vld [vmem:[%s2859_s3 + $0x18] sm:$0xff]  ;;  %v298_v21 = vld [vmem:[%s2859_s3 + $0x20] sm:$0xff]  ;;  %v299_v22 = vld [vmem:[%s2859_s3 + $0x28] sm:$0xff]  ;;  %p275_p5 = scmp.lt.s32.totalorder %s274_s26, 9 }
  0x16   : > { %1818 = vmatprep.mubr.f32.mxu0 %v697_v43  ;;  %2104 = vmatpush3.bf16.msra.mxu0 %v2101_v23  ;;  %v2442_v55 = vsel %vm490_vm1, %v494_v52, %v495_v53  ;;  %v1417_v14 = vld [vmem:[%s2859_s3 + $0x298] sm:$0xff]  ;;  %v320_v15 = vsel %vm314_vm0, %v318_v5, %v319_v6  ;;  %v797_v16 = vrot.slane %v2403_v32, 2  ;;  %v798_v17 = vrot.slane %v2406_v33, 2  ;;  %v1418_v23 = vld [vmem:[%s2859_s3 + $0x2a0] sm:$0xff]  ;;  %v1419_v24 = vld [vmem:[%s2859_s3 + $0x2a8] sm:$0xff]  ;;  %s1483_s30 = sshll.u32 %s2867_s19, 4 }
  0x17   : > { %1978 = vmatprep.subr.bf16.mxu1 %v1977_v34  ;;  %2106 = vmatprep.subr.bf16.mxu0 %v2105_v37  ;;  %v700_v18 = vsel %vm314_vm0, %v698_v8, %v699_v9  ;;  %v1997_v19 = vpack.c.bf16 %v297_v12, %v296_v11  ;;  %v2125_v20 = vpack.c.bf16 %v1417_v14, %v1416_v13  ;;  %v300_v30 = vld [vmem:[%s2859_s3 + $0x30] sm:$0xff]  ;;  %v301_v31 = vld [vmem:[%s2859_s3 + $0x38] sm:$0xff]  ;;  %v303_v38 = vld [vmem:[%s2859_s3 + $0x48] sm:$0xff]  ;;  %s2865_s26 = smov (!%p275_p5, %s274_s26), 9  ;;  %v800_v6 = vrot.slane %v2463_v1, 2  ;;  %s285_s8 = scalar_lea.vmem %s2860_s4, %s1483_s30 }
  0x18   : > { %v799_v25 = vsel %vm490_vm1, %v797_v16, %v798_v17  ;;  %v2001_v27 = vpack.c.bf16 %v299_v22, %v298_v21  ;;  %v2129_v28 = vpack.c.bf16 %v1419_v24, %v1418_v23  ;;  %v1420_v33 = vld [vmem:[%s2859_s3 + $0x2b0] sm:$0xff]  ;;  %v2005_v35 = vpack.c.bf16 %v301_v31, %v300_v30  ;;  %v1422_v39 = vld [vmem:[%s2859_s3 + $0x2c0] sm:$0xff]  ;;  %v1423_v40 = vld [vmem:[%s2859_s3 + $0x2c8] sm:$0xff]  ;;  %s1482_s13 = sshll.u32 %s2865_s26, 5  ;;  %s1349_s9 = sshll.u32 %s2867_s19, 1 }
  0x19   : > { %1980 = vmatpush3.bf16.msra.mxu1 %v1977_v34  ;;  %v1421_v34 = vld [vmem:[%s2859_s3 + $0x2b8] sm:$0xff]  ;;  %v2137_v42 = vpack.c.bf16 %v1423_v40, %v1422_v39  ;;  %v304_v43 = vld [vmem:[%s2859_s3 + $0x50] sm:$0xff]  ;;  %v306_v50 = vld [vmem:[%s2859_s3 + $0x60] sm:$0xff]  ;;  %v492_v13 = vrot.slane %v2398_v29, 2  ;;  %s2600_s11 = scalar_lea.vmem %s2858_s2, %s1482_s13  ;;  %s289_s12 = scalar_lea.vmem %s2861_s5, %s1349_s9 }
  0x1a   : > { %2108 = vmatpush3.bf16.msra.mxu0 %v2105_v37  ;;  %1982 = vmatprep.subr.bf16.mxu1 %v1981_v44  ;;  %v2133_v36 = vpack.c.bf16 %v1421_v34, %v1420_v33  ;;  %v302_v37 = vld [vmem:[%s2859_s3 + $0x40] sm:$0xff]  ;;  %v1424_v45 = vld [vmem:[%s2859_s3 + $0x2d0] sm:$0xff]  ;;  %v307_v51 = vld [vmem:[%s2859_s3 + $0x68] sm:$0xff] }
  0x1b   : > { %2110 = vmatprep.subr.bf16.mxu0 %v2109_v46  ;;  %v2009_v41 = vpack.c.bf16 %v303_v38, %v302_v37  ;;  %v1426_v52 = vld [vmem:[%s2859_s3 + $0x2e0] sm:$0xff]  ;;  %v1427_v53 = vld [vmem:[%s2859_s3 + $0x2e8] sm:$0xff]  ;;  %v308_v57 = vld [vmem:[%s2859_s3 + $0x70] sm:$0xff] }
  0x1c   : > { %v309_v58 = vld [vmem:[%s2859_s3 + $0x78] sm:$0xff]  ;;  %v1428_v59 = vld [vmem:[%s2859_s3 + $0x2f0] sm:$0xff]  ;;  %v1367_v0 = vld [vmem:[%s2859_s3 + $0x108] sm:$0xff] }
  0x1d   : > { %1984 = vmatpush3.bf16.msra.mxu1 %v1981_v44  ;;  %v305_v44 = vld [vmem:[%s2859_s3 + $0x58] sm:$0xff]  ;;  %v1430_v3 = vld [vmem:[%s2859_s3 + $0x300] sm:$0xff]  ;;  %v1431_v4 = vld [vmem:[%s2859_s3 + $0x308] sm:$0xff] }
  0x1e   : > { %2112 = vmatpush3.bf16.msra.mxu0 %v2109_v46  ;;  %1986 = vmatprep.subr.bf16.mxu1 %v1985_v54  ;;  %v1425_v46 = vld [vmem:[%s2859_s3 + $0x2d8] sm:$0xff]  ;;  %v2013_v47 = vpack.c.bf16 %v305_v44, %v304_v43  ;;  %v2153_v8 = vpack.c.bf16 %v1431_v4, %v1430_v3  ;;  %v1368_v9 = vld [vmem:[%s2859_s3 + $0x110] sm:$0xff]  ;;  %v1371_v29 = vld [vmem:[%s2859_s3 + $0x128] sm:$0xff] }
  0x1f   : > { %2114 = vmatprep.subr.bf16.mxu0 %v2113_v56  ;;  %v2141_v49 = vpack.c.bf16 %v1425_v46, %v1424_v45  ;;  %v1429_v60 = vld [vmem:[%s2859_s3 + $0x2f8] sm:$0xff]  ;;  %v1432_v11 = vld [vmem:[%s2859_s3 + $0x310] sm:$0xff]  ;;  %v1434_v17 = vld [vmem:[%s2859_s3 + $0x320] sm:$0xff] }
  0x20   : > { %v2149_v62 = vpack.c.bf16 %v1429_v60, %v1428_v59  ;;  %v1433_v12 = vld [vmem:[%s2859_s3 + $0x318] sm:$0xff]  ;;  %v1436_v24 = vld [vmem:[%s2859_s3 + $0x330] sm:$0xff]  ;;  %v1374_v30 = vld [vmem:[%s2859_s3 + $0x140] sm:$0xff] }
  0x21   : > { %1988 = vmatpush3.bf16.msra.mxu1 %v1985_v54  ;;  %v2017_v54 = vpack.c.bf16 %v307_v51, %v306_v50  ;;  %v2157_v16 = vpack.c.bf16 %v1433_v12, %v1432_v11  ;;  %v1373_v23 = vld [vmem:[%s2859_s3 + $0x138] sm:$0xff]  ;;  %v1375_v31 = vld [vmem:[%s2859_s3 + $0x148] sm:$0xff]  ;;  %v1438_v33 = vld [vmem:[%s2859_s3 + $0x340] sm:$0xff] }
  0x22   : > { %2116 = vmatpush3.bf16.msra.mxu0 %v2113_v56  ;;  %1990 = vmatprep.subr.bf16.mxu1 %v1989_v61  ;;  %v2145_v56 = vpack.c.bf16 %v1427_v53, %v1426_v52  ;;  %v1439_v34 = vld [vmem:[%s2859_s3 + $0x348] sm:$0xff]  ;;  %v1376_v37 = vld [vmem:[%s2859_s3 + $0x150] sm:$0xff]  ;;  %v1377_v38 = vld [vmem:[%s2859_s3 + $0x158] sm:$0xff] }
  0x23   : > { %2118 = vmatprep.subr.bf16.mxu0 %v2117_v63  ;;  %v1440_v39 = vld [vmem:[%s2859_s3 + $0x350] sm:$0xff]  ;;  %v1441_v40 = vld [vmem:[%s2859_s3 + $0x358] sm:$0xff]  ;;  %v1378_v43 = vld [vmem:[%s2859_s3 + $0x160] sm:$0xff] }
  0x24   : > { %v1379_v44 = vld [vmem:[%s2859_s3 + $0x168] sm:$0xff]  ;;  %v1442_v45 = vld [vmem:[%s2859_s3 + $0x360] sm:$0xff]  ;;  %v1380_v50 = vld [vmem:[%s2859_s3 + $0x170] sm:$0xff] }
  0x25   : > { %1992 = vmatpush3.bf16.msra.mxu1 %v1989_v61  ;;  %v2021_v61 = vpack.c.bf16 %v309_v58, %v308_v57  ;;  %v1443_v46 = vld [vmem:[%s2859_s3 + $0x368] sm:$0xff]  ;;  %v1381_v51 = vld [vmem:[%s2859_s3 + $0x178] sm:$0xff]  ;;  %v1444_v52 = vld [vmem:[%s2859_s3 + $0x370] sm:$0xff] }
  0x26   : > { %2120 = vmatpush3.bf16.msra.mxu0 %v2117_v63  ;;  %1994 = vmatprep.subr.bf16.mxu1 %v1993_v7  ;;  %v1366_v63 = vld [vmem:[%s2859_s3 + $0x100] sm:$0xff]  ;;  %v1445_v53 = vld [vmem:[%s2859_s3 + $0x378] sm:$0xff]  ;;  %v1383_v58 = vld [vmem:[%s2859_s3 + $0x188] sm:$0xff] }
  0x27   : > { %2122 = vmatprep.subr.bf16.mxu0 %v2121_v10  ;;  %v2025_v5 = vpack.c.bf16 %v1367_v0, %v1366_v63  ;;  %v1382_v57 = vld [vmem:[%s2859_s3 + $0x180] sm:$0xff]  ;;  %v1447_v60 = vld [vmem:[%s2859_s3 + $0x388] sm:$0xff]  ;;  %v1384_v0 = vld [vmem:[%s2859_s3 + $0x190] sm:$0xff] }
  0x28   : > { %1679 = vmatmul.mubr.f32.vlgmr.msra.gmra.mrb[0].mxu1 %v320_v15  ;;  %v1446_v59 = vld [vmem:[%s2859_s3 + $0x380] sm:$0xff]  ;;  %v1385_v3 = vld [vmem:[%s2859_s3 + $0x198] sm:$0xff]  ;;  %v1448_v4 = vld [vmem:[%s2859_s3 + $0x390] sm:$0xff] }
  0x29   : > { %1996 = vmatpush3.bf16.msra.mxu1 %v1993_v7  ;;  %1819 = vmatmul.mubr.f32.vlgmr.msra.gmra.mrb[0].mxu0 %v700_v18  ;;  %v801_v7 = vrot.slane %v2466_v2, 2  ;;  %v491_v2 = vrot.slane %v2389_v26, 2  ;;  %v1435_v18 = vld [vmem:[%s2859_s3 + $0x328] sm:$0xff]  ;;  %v2185_v63 = vpack.c.bf16 %v1447_v60, %v1446_v59  ;;  %v1386_v11 = vld [vmem:[%s2859_s3 + $0x1a0] sm:$0xff] }
  0x2a   : > { %2124 = vmatpush3.bf16.msra.mxu0 %v2121_v10  ;;  %1998 = vmatprep.subr.bf16.mxu1 %v1997_v19  ;;  %v1369_v10 = vld [vmem:[%s2859_s3 + $0x118] sm:$0xff]  ;;  %v2161_v22 = vpack.c.bf16 %v1435_v18, %v1434_v17  ;;  %v1387_v12 = vld [vmem:[%s2859_s3 + $0x1a8] sm:$0xff]  ;;  %v1466_v60 = vld [vmem:[%s2859_s3 + $0x420] sm:$0xff] }
  0x2b   : > { %2126 = vmatprep.subr.bf16.mxu0 %v2125_v20  ;;  %1713 = vmatprep.mubr.f32.mxu1 %v2389_v26  ;;  %v802_v14 = vsel %vm490_vm1, %v800_v6, %v801_v7  ;;  %v2029_v15 = vpack.c.bf16 %v1369_v10, %v1368_v9  ;;  %v1370_v26 = vld [vmem:[%s2859_s3 + $0x120] sm:$0xff]  ;;  %v2061_v9 = vpack.c.bf16 %v1385_v3, %v1384_v0  ;;  %v1453_v17 = vld [vmem:[%s2859_s3 + $0x3b8] sm:$0xff] }
  0x2c   : > { %1853 = vmatprep.mubr.f32.mxu0 %v799_v25  ;;  %v2033_v21 = vpack.c.bf16 %v1371_v29, %v1370_v26  ;;  %v1437_v25 = vld [vmem:[%s2859_s3 + $0x338] sm:$0xff]  ;;  %v1452_v29 = vld [vmem:[%s2859_s3 + $0x3b0] sm:$0xff]  ;;  %v1470_v3 = vld [vmem:[%s2859_s3 + $0x440] sm:$0xff] }
  0x2d   : > { %2000 = vmatpush3.bf16.msra.mxu1 %v1997_v19  ;;  %v493_v19 = vsel %vm490_vm1, %v491_v2, %v492_v13  ;;  %v1450_v2 = vld [vmem:[%s2859_s3 + $0x3a0] sm:$0xff]  ;;  %v1451_v13 = vld [vmem:[%s2859_s3 + $0x3a8] sm:$0xff]  ;;  %v1389_v26 = vld [vmem:[%s2859_s3 + $0x1b8] sm:$0xff] }
  0x2e   : > { %2128 = vmatpush3.bf16.msra.mxu0 %v2125_v20  ;;  %2002 = vmatprep.subr.bf16.mxu1 %v2001_v27  ;;  %v2617_v20 = vld [vmem:[%s2600_s11] sm:$0xff] }
  0x2f   : > { %2130 = vmatprep.subr.bf16.mxu0 %v2129_v28  ;;  %v1001_v6 = vrot.slane %v2617_v20, 1 }
  0x31   : > { %2004 = vmatpush3.bf16.msra.mxu1 %v2001_v27 }
  0x32   : > { %2132 = vmatpush3.bf16.msra.mxu0 %v2129_v28  ;;  %2006 = vmatprep.subr.bf16.mxu1 %v2005_v35  ;;  %v2165_v28 = vpack.c.bf16 %v1437_v25, %v1436_v24  ;;  %v1392_v25 = vld [vmem:[%s2859_s3 + $0x1d0] sm:$0xff] }
  0x33   : > { %2134 = vmatprep.subr.bf16.mxu0 %v2133_v36 }
  0x35   : > { %2008 = vmatpush3.bf16.msra.mxu1 %v2005_v35  ;;  %v2041_v35 = vpack.c.bf16 %v1375_v31, %v1374_v30  ;;  %v1457_v30 = vld [vmem:[%s2859_s3 + $0x3d8] sm:$0xff] }
  0x36   : > { %2136 = vmatpush3.bf16.msra.mxu0 %v2133_v36  ;;  %2010 = vmatprep.subr.bf16.mxu1 %v2009_v41  ;;  %v2169_v36 = vpack.c.bf16 %v1439_v34, %v1438_v33  ;;  %v1394_v34 = vld [vmem:[%s2859_s3 + $0x1e0] sm:$0xff] }
  0x37   : > { %2138 = vmatprep.subr.bf16.mxu0 %v2137_v42 }
  0x39   : > { %2012 = vmatpush3.bf16.msra.mxu1 %v2009_v41  ;;  %v2045_v41 = vpack.c.bf16 %v1377_v38, %v1376_v37  ;;  %v1459_v37 = vld [vmem:[%s2859_s3 + $0x3e8] sm:$0xff] }
  0x3a   : > { %2140 = vmatpush3.bf16.msra.mxu0 %v2137_v42  ;;  %2014 = vmatprep.subr.bf16.mxu1 %v2013_v47  ;;  %v2173_v42 = vpack.c.bf16 %v1441_v40, %v1440_v39  ;;  %v1396_v40 = vld [vmem:[%s2859_s3 + $0x1f0] sm:$0xff] }
  0x3b   : > { %2142 = vmatprep.subr.bf16.mxu0 %v2141_v49 }
  0x3d   : > { %2016 = vmatpush3.bf16.msra.mxu1 %v2013_v47  ;;  %v2049_v47 = vpack.c.bf16 %v1379_v44, %v1378_v43  ;;  %v1461_v43 = vld [vmem:[%s2859_s3 + $0x3f8] sm:$0xff] }
  0x3e   : > { %2144 = vmatpush3.bf16.msra.mxu0 %v2141_v49  ;;  %2018 = vmatprep.subr.bf16.mxu1 %v2017_v54  ;;  %v2177_v49 = vpack.c.bf16 %v1443_v46, %v1442_v45  ;;  %v902_v46 = vld [vmem:[%s2600_s11 + $0x18] sm:$0x3] }
  0x3f   : > { %2146 = vmatprep.subr.bf16.mxu0 %v2145_v56 }
  0x41   : > { %2020 = vmatpush3.bf16.msra.mxu1 %v2017_v54  ;;  %v2053_v54 = vpack.c.bf16 %v1381_v51, %v1380_v50  ;;  %v1005_v51 = vrot.slane %v902_v46, 1 }
  0x42   : > { %2148 = vmatpush3.bf16.msra.mxu0 %v2145_v56  ;;  %2022 = vmatprep.subr.bf16.mxu1 %v2021_v61  ;;  %v2181_v56 = vpack.c.bf16 %v1445_v53, %v1444_v52  ;;  %v1103_v52 = vrot.slane %v2617_v20, 2 }
  0x43   : > { %2150 = vmatprep.subr.bf16.mxu0 %v2149_v62 }
  0x45   : > { %2024 = vmatpush3.bf16.msra.mxu1 %v2021_v61  ;;  %v2057_v61 = vpack.c.bf16 %v1383_v58, %v1382_v57  ;;  %v1465_v57 = vld [vmem:[%s2859_s3 + $0x418] sm:$0xff] }
  0x46   : > { %2152 = vmatpush3.bf16.msra.mxu0 %v2149_v62  ;;  %2026 = vmatprep.subr.bf16.mxu1 %v2025_v5  ;;  %v2693_v62 = vld [vmem:[%s2600_s11 + $0x8] sm:$0x3] }
  0x47   : > { %2154 = vmatprep.subr.bf16.mxu0 %v2153_v8  ;;  %v1002_v7 = vrot.slane %v2693_v62, 1 }
  0x48   : > { %1714 = vmatmul.mubr.f32.vlgmr.msra.gmra.mrb[0].mxu1 %v2431_v48  ;;  %v1372_v48 = vld [vmem:[%s2859_s3 + $0x130] sm:$0xff] }
  0x49   : > { %2028 = vmatpush3.bf16.msra.mxu1 %v2025_v5  ;;  %1854 = vmatmul.mubr.f32.vlgmr.msra.gmra.mrb[0].mxu0 %v802_v14  ;;  %v2037_v27 = vpack.c.bf16 %v1373_v23, %v1372_v48  ;;  %v1449_v5 = vld [vmem:[%s2859_s3 + $0x398] sm:$0xff]  ;;  %v1003_v14 = vsel %vm314_vm0, %v1001_v6, %v1002_v7  ;;  %v1455_v48 = vld [vmem:[%s2859_s3 + $0x3c8] sm:$0xff]  ;;  %v1472_v6 = vld [vmem:[%s2859_s3 + $0x450] sm:$0xff] }
  0x4a   : > { %2156 = vmatpush3.bf16.msra.mxu0 %v2153_v8  ;;  %2030 = vmatprep.subr.bf16.mxu1 %v2029_v15  ;;  %v2710_v8 = vld [vmem:[%s2600_s11 + $0x10] sm:$0xff]  ;;  %v2189_v10 = vpack.c.bf16 %v1449_v5, %v1448_v4  ;;  %v1471_v4 = vld [vmem:[%s2859_s3 + $0x448] sm:$0xff]  ;;  %v1473_v7 = vld [vmem:[%s2859_s3 + $0x458] sm:$0xff] }
  0x4b   : > { %2158 = vmatprep.subr.bf16.mxu0 %v2157_v16  ;;  %1748 = vmatprep.mubr.f32.mxu1 %v493_v19  ;;  %v2197_v19 = vpack.c.bf16 %v1453_v17, %v1452_v29  ;;  %v1004_v50 = vrot.slane %v2710_v8, 1  ;;  %v2233_v5 = vpack.c.bf16 %v1471_v4, %v1470_v3 }
  0x4c   : > { %1888 = vmatprep.mubr.f32.mxu0 %v2617_v20 }
  0x4d   : > { %2032 = vmatpush3.bf16.msra.mxu1 %v2029_v15  ;;  %v2065_v15 = vpack.c.bf16 %v1387_v12, %v1386_v11  ;;  %v1006_v58 = vsel %vm314_vm0, %v1004_v50, %v1005_v51  ;;  %v1475_v11 = vld [vmem:[%s2859_s3 + $0x468] sm:$0xff] }
  0x4e   : > { %2160 = vmatpush3.bf16.msra.mxu0 %v2157_v16  ;;  %2034 = vmatprep.subr.bf16.mxu1 %v2033_v21  ;;  %v2193_v16 = vpack.c.bf16 %v1451_v13, %v1450_v2  ;;  %v1476_v2 = vld [vmem:[%s2859_s3 + $0x470] sm:$0xff]  ;;  %v1477_v13 = vld [vmem:[%s2859_s3 + $0x478] sm:$0xff] }
  0x4f   : > { %2162 = vmatprep.subr.bf16.mxu0 %v2161_v22 }
  0x51   : > { %2036 = vmatpush3.bf16.msra.mxu1 %v2033_v21  ;;  %v1390_v21 = vld [vmem:[%s2859_s3 + $0x1c0] sm:$0xff] }
  0x52   : > { %2164 = vmatpush3.bf16.msra.mxu0 %v2161_v22  ;;  %2038 = vmatprep.subr.bf16.mxu1 %v2037_v27  ;;  %v1454_v22 = vld [vmem:[%s2859_s3 + $0x3c0] sm:$0xff] }
  0x53   : > { %2166 = vmatprep.subr.bf16.mxu0 %v2165_v28  ;;  %v2201_v24 = vpack.c.bf16 %v1455_v48, %v1454_v22 }
  0x55   : > { %2040 = vmatpush3.bf16.msra.mxu1 %v2037_v27  ;;  %v1393_v27 = vld [vmem:[%s2859_s3 + $0x1d8] sm:$0xff] }
  0x56   : > { %2168 = vmatpush3.bf16.msra.mxu0 %v2165_v28  ;;  %2042 = vmatprep.subr.bf16.mxu1 %v2041_v35  ;;  %v1456_v28 = vld [vmem:[%s2859_s3 + $0x3d0] sm:$0xff]  ;;  %v2077_v31 = vpack.c.bf16 %v1393_v27, %v1392_v25 }
  0x57   : > { %2170 = vmatprep.subr.bf16.mxu0 %v2169_v36  ;;  %v2205_v33 = vpack.c.bf16 %v1457_v30, %v1456_v28 }
  0x59   : > { %2044 = vmatpush3.bf16.msra.mxu1 %v2041_v35  ;;  %v1395_v35 = vld [vmem:[%s2859_s3 + $0x1e8] sm:$0xff] }
  0x5a   : > { %2172 = vmatpush3.bf16.msra.mxu0 %v2169_v36  ;;  %2046 = vmatprep.subr.bf16.mxu1 %v2045_v41  ;;  %v1458_v36 = vld [vmem:[%s2859_s3 + $0x3e0] sm:$0xff]  ;;  %v2081_v38 = vpack.c.bf16 %v1395_v35, %v1394_v34 }
  0x5b   : > { %2174 = vmatprep.subr.bf16.mxu0 %v2173_v42  ;;  %v2209_v39 = vpack.c.bf16 %v1459_v37, %v1458_v36 }
  0x5d   : > { %2048 = vmatpush3.bf16.msra.mxu1 %v2045_v41  ;;  %v1397_v41 = vld [vmem:[%s2859_s3 + $0x1f8] sm:$0xff] }
  0x5e   : > { %2176 = vmatpush3.bf16.msra.mxu0 %v2173_v42  ;;  %2050 = vmatprep.subr.bf16.mxu1 %v2049_v47  ;;  %v1460_v42 = vld [vmem:[%s2859_s3 + $0x3f0] sm:$0xff]  ;;  %v2085_v44 = vpack.c.bf16 %v1397_v41, %v1396_v40 }
  0x5f   : > { %2178 = vmatprep.subr.bf16.mxu0 %v2177_v49  ;;  %v2213_v45 = vpack.c.bf16 %v1461_v43, %v1460_v42 }
  0x61   : > { %2052 = vmatpush3.bf16.msra.mxu1 %v2049_v47  ;;  %v1462_v47 = vld [vmem:[%s2859_s3 + $0x400] sm:$0xff] }
  0x62   : > { %2180 = vmatpush3.bf16.msra.mxu0 %v2177_v49  ;;  %2054 = vmatprep.subr.bf16.mxu1 %v2053_v54  ;;  %v1463_v49 = vld [vmem:[%s2859_s3 + $0x408] sm:$0xff] }
  0x63   : > { %2182 = vmatprep.subr.bf16.mxu0 %v2181_v56  ;;  %v2217_v53 = vpack.c.bf16 %v1463_v49, %v1462_v47 }
  0x65   : > { %2056 = vmatpush3.bf16.msra.mxu1 %v2053_v54  ;;  %v1104_v54 = vrot.slane %v2693_v62, 2 }
  0x66   : > { %2184 = vmatpush3.bf16.msra.mxu0 %v2181_v56  ;;  %2058 = vmatprep.subr.bf16.mxu1 %v2057_v61  ;;  %v1464_v56 = vld [vmem:[%s2859_s3 + $0x410] sm:$0xff] }
  0x67   : > { %2186 = vmatprep.subr.bf16.mxu0 %v2185_v63  ;;  %v2221_v59 = vpack.c.bf16 %v1465_v57, %v1464_v56  ;;  %v1105_v20 = vsel %vm490_vm1, %v1103_v52, %v1104_v54 }
  0x68   : > { %1749 = vmatmul.mubr.f32.vlgmr.msra.gmra.mrb[0].mxu1 %v2442_v55  ;;  %v1388_v55 = vld [vmem:[%s2859_s3 + $0x1b0] sm:$0xff] }
  0x69   : > { %2060 = vmatpush3.bf16.msra.mxu1 %v2057_v61  ;;  %1889 = vmatmul.mubr.f32.vlgmr.msra.gmra.mrb[0].mxu0 %v2710_v8  ;;  %v2069_v18 = vpack.c.bf16 %v1389_v26, %v1388_v55  ;;  %v1467_v61 = vld [vmem:[%s2859_s3 + $0x428] sm:$0xff] }
  0x6a   : > { %2188 = vmatpush3.bf16.msra.mxu0 %v2185_v63  ;;  %2062 = vmatprep.subr.bf16.mxu1 %v2061_v9  ;;  %v2225_v62 = vpack.c.bf16 %v1467_v61, %v1466_v60  ;;  %v1468_v63 = vld [vmem:[%s2859_s3 + $0x430] sm:$0xff] }
  0x6b   : > { %2190 = vmatprep.subr.bf16.mxu0 %v2189_v10  ;;  %1783 = vmatprep.mubr.f32.mxu1 %v2403_v32  ;;  %v1391_v32 = vld [vmem:[%s2859_s3 + $0x1c8] sm:$0xff] }
  0x6c   : > { %1923 = vmatprep.mubr.f32.mxu0 %v1003_v14  ;;  %v2073_v23 = vpack.c.bf16 %v1391_v32, %v1390_v21  ;;  %v2245_v14 = vpack.c.bf16 %v1477_v13, %v1476_v2 }
  0x6d   : > { %2064 = vmatpush3.bf16.msra.mxu1 %v2061_v9  ;;  %v2237_v9 = vpack.c.bf16 %v1473_v7, %v1472_v6 }
  0x6e   : > { %2192 = vmatpush3.bf16.msra.mxu0 %v2189_v10  ;;  %2066 = vmatprep.subr.bf16.mxu1 %v2065_v15  ;;  %v1474_v10 = vld [vmem:[%s2859_s3 + $0x460] sm:$0xff] }
  0x6f   : > { %2194 = vmatprep.subr.bf16.mxu0 %v2193_v16  ;;  %v2241_v12 = vpack.c.bf16 %v1475_v11, %v1474_v10 }
  0x71   : > { %2068 = vmatpush3.bf16.msra.mxu1 %v2065_v15  ;;  %v1106_v15 = vrot.slane %v2710_v8, 2 }
  0x72   : > { %2196 = vmatpush3.bf16.msra.mxu0 %v2193_v16  ;;  %2070 = vmatprep.subr.bf16.mxu1 %v2069_v18  ;;  %v1107_v16 = vrot.slane %v902_v46, 2 }
  0x73   : > { %2198 = vmatprep.subr.bf16.mxu0 %v2197_v19 }
  0x74   : > { %v1108_v55 = vsel %vm490_vm1, %v1106_v15, %v1107_v16 }
  0x75   : > { %2072 = vmatpush3.bf16.msra.mxu1 %v2069_v18 }
  0x76   : > { %2200 = vmatpush3.bf16.msra.mxu0 %v2197_v19  ;;  %2074 = vmatprep.subr.bf16.mxu1 %v2073_v23 }
  0x77   : > { %2202 = vmatprep.subr.bf16.mxu0 %v2201_v24 }
  0x79   : > { %2076 = vmatpush3.bf16.msra.mxu1 %v2073_v23 }
  0x7a   : > { %2204 = vmatpush3.bf16.msra.mxu0 %v2201_v24  ;;  %2078 = vmatprep.subr.bf16.mxu1 %v2077_v31 }
  0x7b   : > { %2206 = vmatprep.subr.bf16.mxu0 %v2205_v33 }
  0x7d   : > { %2080 = vmatpush3.bf16.msra.mxu1 %v2077_v31 }
  0x7e   : > { %2208 = vmatpush3.bf16.msra.mxu0 %v2205_v33  ;;  %2082 = vmatprep.subr.bf16.mxu1 %v2081_v38 }
  0x7f   : > { %2210 = vmatprep.subr.bf16.mxu0 %v2209_v39 }
  0x81   : > { %2084 = vmatpush3.bf16.msra.mxu1 %v2081_v38 }
  0x82   : > { %2212 = vmatpush3.bf16.msra.mxu0 %v2209_v39  ;;  %2086 = vmatprep.subr.bf16.mxu1 %v2085_v44 }
  0x83   : > { %2214 = vmatprep.subr.bf16.mxu0 %v2213_v45 }
  0x85   : > { %2088 = vmatpush3.bf16.msra.mxu1 %v2085_v44 }
  0x86   : > { %2216 = vmatpush3.bf16.msra.mxu0 %v2213_v45 }
  0x87   : > { %2218 = vmatprep.subr.bf16.mxu0 %v2217_v53 }
  0x88   : > { %1784 = vmatmul.mubr.f32.vlgmr.msra.gmra.mrb[0].mxu1 %v2463_v1  ;;  %v1469_v1 = vld [vmem:[%s2859_s3 + $0x438] sm:$0xff] }
  0x89   : > { %1924 = vmatmul.mubr.f32.vlgmr.msra.gmra.mrb[0].mxu0 %v1006_v58  ;;  %v2229_v0 = vpack.c.bf16 %v1469_v1, %v1468_v63 }
  0x8a   : > { %2220 = vmatpush3.bf16.msra.mxu0 %v2217_v53  ;;  %1958 = vmatprep.mubr.f32.mxu0 %v1105_v20 }
  0x8b   : > { %2222 = vmatprep.subr.bf16.mxu0 %v2221_v59 }
  0x8e   : > { %2224 = vmatpush3.bf16.msra.mxu0 %v2221_v59 }
  0x8f   : > { %2226 = vmatprep.subr.bf16.mxu0 %v2225_v62 }
  0x92   : > { %2228 = vmatpush3.bf16.msra.mxu0 %v2225_v62 }
  0x93   : > { %2230 = vmatprep.subr.bf16.mxu0 %v2229_v0 }
  0x96   : > { %2232 = vmatpush3.bf16.msra.mxu0 %v2229_v0 }
  0x97   : > { %2234 = vmatprep.subr.bf16.mxu0 %v2233_v5 }
  0x9a   : > { %2236 = vmatpush3.bf16.msra.mxu0 %v2233_v5 }
  0x9b   : > { %2238 = vmatprep.subr.bf16.mxu0 %v2237_v9 }
  0x9e   : > { %2240 = vmatpush3.bf16.msra.mxu0 %v2237_v9 }
  0x9f   : > { %2242 = vmatprep.subr.bf16.mxu0 %v2241_v12 }
  0xa2   : > { %2244 = vmatpush3.bf16.msra.mxu0 %v2241_v12 }
  0xa3   : > { %2246 = vmatprep.subr.bf16.mxu0 %v2245_v14 }
  0xa6   : > { %2248 = vmatpush3.bf16.msra.mxu0 %v2245_v14 }
  0xa9   : > { %1959 = vmatmul.mubr.f32.vlgmr.msra.gmra.mrb[0].mxu0 %v1108_v55 }
 0x15b   : > { %v1785_v26 = vpop.f32.mrb[0].mxu1 }
 0x15c   : > { %v680_v29 = vpop.f32.mrb[1].mxu1 }
 0x17c   : > { %v1960_v17 = vpop.f32.mrb[0].mxu0 }
 0x17d   : > { %v2249_v18 = vadd.f32 %v1960_v17, %v1785_v26  ;;  %v1194_v19 = vpop.f32.mrb[1].mxu0 }
 0x17e   : > { %v2250_v8 = vadd.f32 %v1194_v19, %v680_v29 }
 0x17f   : > { %1206 = vst [vmem:[%s285_s8 + $0x8] sm:$0xff] %v2249_v18  ;;  %v1215_v21 = vmul.f32 %v2249_v18, %v2249_v18 }
 0x180   : > { %1205 = vst [vmem:[%s285_s8] sm:$0xff] %v2250_v8  ;;  %v1207_v32 = vadd.f32 %v2250_v8, %v2249_v18  ;;  %v1214_v22 = vmul.f32 %v2250_v8, %v2250_v8 }
 0x182   : > { %v1208_v48 = vrot.slane %v1207_v32, 4  ;;  %v1216_v23 = vadd.f32 %v1215_v21, %v1214_v22 }
 0x184   : > { %v1209_v24 = vadd.f32 %v1208_v48, %v1207_v32  ;;  %v1217_v25 = vrot.slane %v1216_v23, 4 }
 0x186   : > { %v1210_v27 = vrot.slane %v1209_v24, 2  ;;  %v1218_v28 = vadd.f32 %v1217_v25, %v1216_v23 }
 0x188   : > { %v1211_v30 = vadd.f32 %v1210_v27, %v1209_v24  ;;  %v1219_v31 = vrot.slane %v1218_v28, 2 }
 0x18a   : > { %v1212_v33 = vrot.slane %v1211_v30, 1  ;;  %v1220_v34 = vadd.f32 %v1219_v31, %v1218_v28 }
 0x18c   : > { %v1221_v35 = vrot.slane %v1220_v34, 1  ;;  %v1213_v36 = vadd.f32 %v1212_v33, %v1211_v30 }
 0x18e   : > { %v1222_v37 = vadd.f32 %v1221_v35, %v1220_v34 }
 0x190   : > { %v1224_v38 = vsel %vm1223_vm2, %v1213_v36, %v1222_v37 }
 0x191   : > { %1225 = vst [vmem:[%s289_s12] sm:$0x3] %v1224_v38 }
 0x192 PF: > { %s16_s18 = sadd.s32 1, %s2279_s18  }
 0x193   : > { %p13_p7 = scmp.ge.s32.totalorder %s16_s18, 10  }
 0x195   :  { %15 = sbr.rel (!%p13_p7) target bundleno = 1 (0x1), region = 92 }

</bundles_post_ra>
